<compile_context>
chip_gen: v7x
topology: tpu7x:2x2x1
jax: 0.10.0
libtpu: 0.0.40
codegen_flags: <defaults>
</compile_context>

<pallas_src>
import jax
import jax.numpy as jnp
from jax import lax
from jax.experimental import pallas as pl
from jax.experimental.pallas import tpu as pltpu

_LANES = 128
_ROW_ALIGN = 16            # block sublane granularity valid for f32 (8,128) and bf16 (16,128)
_BLOCK_ROWS_CAP = 8192     # 8192 * 128 * 4B = 4 MiB per f32 input block


def _cdiv(a, b):
    return -(-a // b)


def _round_up(v, m):
    return _cdiv(v, m) * m


def _vmem_capacity_bytes():
    try:
        cap = getattr(pltpu.get_tpu_info(), "vmem_capacity_bytes", None)
        if cap:
            return int(cap)
    except Exception:
        pass
    return 64 * 1024 * 1024          # conservative (v7x per-TensorCore VMEM)


_SINGLE_TC_TAGS = ("v2", "v3", "v5e", "v5 lite", "v5lite", "v6e", "v6 lite", "v6lite")


def _num_tensorcores_per_device():
    """2 on v4/v5p (megacore) and v7x; 1 on single-TensorCore chips."""
    try:
        kind = jax.devices()[0].device_kind.lower()
    except Exception:
        return 2
    if any(tag in kind for tag in _SINGLE_TC_TAGS):
        return 1
    return 2


def _make_kernel(*, use_mask, ragged, rows, block_rows, steps):
    """Kernel factory. `rows`, `block_rows`, `steps` are static Python ints."""

    def kernel(*refs):
        if use_mask:
            x_ref, y_ref, m_ref, out_ref = refs
        else:
            x_ref, y_ref, out_ref = refs
            m_ref = None

        s = pl.program_id(1)

        @pl.when(s == 0)
        def _():
            out_ref[...] = jnp.zeros_like(out_ref)

        absdiff = jnp.abs(x_ref[...] - y_ref[...]).astype(jnp.float32)
        if use_mask:
            m = m_ref[...]
            # |x*m - y*m| + |x*(1-m) - y*(1-m)| == (|m| + |1-m|) * |x - y|
            w = (jnp.abs(m) + jnp.abs(1.0 - m)).astype(jnp.float32)
            delta = w * absdiff
        else:
            delta = absdiff

        def _accumulate(vals):
            # vreg-sized running partial: same VALU add count as a full-block
            # accumulator, but no extra VMEM read-modify-write traffic.
            out_ref[...] += jnp.sum(vals.reshape(-1, 8, _LANES), axis=0)

        if not ragged:
            _accumulate(delta)
        else:
            block_idx = pl.program_id(0) * steps + s
            is_edge = (block_idx + 1) * block_rows > rows

            @pl.when(jnp.logical_not(is_edge))
            def _():
                _accumulate(delta)

            @pl.when(is_edge)
            def _():
                # Only the (at most one real + one duplicated) edge block pays
                # for the row mask; OOB rows contribute exactly zero.
                row_ids = (block_idx * block_rows
                           + lax.broadcasted_iota(jnp.int32, (block_rows, 1), 0))
                _accumulate(jnp.where(row_ids < rows, delta, 0.0))

    return kernel


def _to_lane_slab(a, slab_rows):
    """Flatten to (slab_rows, 128).  Zero-pads only when strictly required."""
    flat = a.reshape(-1)
    need = slab_rows * _LANES
    if need != flat.shape[0]:
        # Padded x == y == 0 -> |x - y| == 0, so pads contribute nothing.
        flat = jnp.pad(flat, (0, need - flat.shape[0]))
    return flat.reshape(slab_rows, _LANES)


def mask3_loss(x, y, mask, *, assume_binary_mask=False):
    """Pallas implementation of mask3.forward(x, y, mask) -> scalar f32."""
    assert x.shape == y.shape == mask.shape
    total_n = x.size                      # true element count (mean denominator)
    if total_n == 0:
        return jnp.float32(0.0)

    rows_exact, rem = divmod(total_n, _LANES)
    if rem == 0 and rows_exact >= _ROW_ALIGN:
        slab_rows = rows_exact            # pure reshape — no extra HBM traffic
    else:
        # TODO(synk): element counts that are not a multiple of 128 (or tiny
        # inputs) still need a minimally padded copy; pads are zeros and add 0.
        slab_rows = max(_ROW_ALIGN, _round_up(_cdiv(total_n, _LANES), _ROW_ALIGN))

    operands = [x, y] if assume_binary_mask else [x, y, mask]
    stream_bytes = sum(a.dtype.itemsize for a in operands)

    # Generation-aware block sizing (v7x has 64 MiB VMEM vs 128 MiB on v5e/v6e).
    vmem_cap = _vmem_capacity_bytes()
    vmem_budget = min(vmem_cap * 5 // 8, 48 * 1024 * 1024)
    per_row_bytes = stream_bytes * _LANES * 2            # double-buffered inputs
    cap_rows = max(_ROW_ALIGN,
                   (vmem_budget // per_row_bytes) // _ROW_ALIGN * _ROW_ALIGN)
    block_rows = min(cap_rows, _BLOCK_ROWS_CAP,
                     max(_ROW_ALIGN, slab_rows // _ROW_ALIGN * _ROW_ALIGN))
    vmem_limit = int(min(vmem_cap, vmem_budget + 16 * 1024 * 1024))

    nb = _cdiv(slab_rows, block_rows)
    num_parts = min(_num_tensorcores_per_device(), nb)
    steps = _cdiv(nb, num_parts)
    # Ragged if the last real block is partial OR a 2-way split duplicates a
    # block (odd nb); both are neutralized by the in-kernel row mask.
    ragged = (num_parts * steps * block_rows) != slab_rows

    slabs = [_to_lane_slab(a, slab_rows) for a in operands]

    if num_parts * steps > nb:
        # Duplicate trailing step: clamp the DMA to the last valid block; the
        # kernel masks its contribution to zero (uses the unclamped index).
        def in_index(p, s, _steps=steps, _nb=nb):
            return (jnp.minimum(p * _steps + s, _nb - 1), 0)
    else:
        def in_index(p, s, _steps=steps):
            return (p * _steps + s, 0)

    in_spec = pl.BlockSpec((block_rows, _LANES), in_index)
    # One resident vreg-sized (8,128) f32 partial per partition.
    out_spec = pl.BlockSpec((8, _LANES), lambda p, s: (p, 0))

    kernel = _make_kernel(use_mask=not assume_binary_mask, ragged=ragged,
                          rows=slab_rows, block_rows=block_rows, steps=steps)

    partials = pl.pallas_call(
        kernel,
        out_shape=jax.ShapeDtypeStruct((num_parts * 8, _LANES), jnp.float32),
        grid_spec=pltpu.PrefetchScalarGridSpec(
            num_scalar_prefetch=0,
            grid=(num_parts, steps),
            in_specs=[in_spec] * len(slabs),
            out_specs=out_spec,
        ),
        compiler_params=pltpu.CompilerParams(
            dimension_semantics=("parallel", "arbitrary"),
            vmem_limit_bytes=vmem_limit,
        ),
    )(*slabs)

    return jnp.sum(partials) / jnp.float32(total_n)


def _reference(x, y, mask):
    d1 = jnp.abs(x * mask - y * mask)
    d2 = jnp.abs(x * (1.0 - mask) - y * (1.0 - mask))
    return jnp.mean(d1) + jnp.mean(d2)


if __name__ == "__main__":
    key = jax.random.PRNGKey(0)

    def _case(shape, check_binary_fast_path):
        kx, ky, km = jax.random.split(jax.random.fold_in(key, hash(shape) % 997), 3)
        x = jax.random.normal(kx, shape, dtype=jnp.float32)
        y = jax.random.normal(ky, shape, dtype=jnp.float32)
        mask = (jax.random.uniform(km, shape) > 0.5).astype(jnp.float32)

        ref = _reference(x, y, mask)
        loss = mask3_loss(x, y, mask)
        jax.block_until_ready(loss)
        assert jnp.allclose(loss, ref, rtol=1e-5, atol=1e-6), (shape, loss, ref)

        if check_binary_fast_path:
            loss_fast = mask3_loss(x, y, mask, assume_binary_mask=True)
            jax.block_until_ready(loss_fast)
            assert jnp.allclose(loss_fast, ref, rtol=1e-5, atol=1e-6), (shape, loss_fast, ref)

    # Primary NCHW case (clean reshape path, no padding, no ragged blocks).
    _case((2, 4, 16, 16), check_binary_fast_path=True)
    # Ragged-edge path: rows not a multiple of block_rows -> in-kernel row mask.
    _case((2, 4, 16, 20), check_binary_fast_path=False)
    # Non-128-multiple element count -> minimal zero-pad fallback.
    _case((3, 5, 7, 11), check_binary_fast_path=False)

    print("KERNEL_OK")
</pallas_src>

<mosaic_0001>
module attributes {stable_mosaic.version = 11 : i64} {
  func.func @kernel(%arg0: i32, %arg1: i32, %arg2: memref<16x128xf32, #tpu.memory_space<vmem>>, %arg3: memref<16x128xf32, #tpu.memory_space<vmem>>, %arg4: memref<16x128xf32, #tpu.memory_space<vmem>>, %arg5: memref<8x128xf32, #tpu.memory_space<vmem>>) attributes {dimension_semantics = [#tpu.dimension_semantics<parallel>, #tpu.dimension_semantics<arbitrary>], iteration_bounds = array<i64: 1, 1>, scalar_prefetch = 0 : i64, scratch_operands = 0 : i64, tpu.core_type = #tpu.core_type<tc>, window_params = [{transform_indices = @transform_0, window_bounds = array<i64: 16, 128>}, {transform_indices = @transform_1, window_bounds = array<i64: 16, 128>}, {transform_indices = @transform_2, window_bounds = array<i64: 16, 128>}, {transform_indices = @transform_3, window_bounds = array<i64: 8, 128>}]} {
    %c0_i32 = arith.constant 0 : i32
    %0 = arith.cmpi eq, %arg1, %c0_i32 : i32
    %1 = arith.extui %0 : i1 to i32
    %c0_i32_0 = arith.constant 0 : i32
    %2 = arith.cmpi ne, %1, %c0_i32_0 : i32
    scf.if %2 {
      %cst_11 = arith.constant 0.000000e+00 : f32
      %19 = vector.broadcast %cst_11 : f32 to vector<8x128xf32>
      %c0_12 = arith.constant 0 : index
      %c0_13 = arith.constant 0 : index
      %20 = vector.load %arg5[%c0_12, %c0_13] : memref<8x128xf32, #tpu.memory_space<vmem>>, vector<8x128xf32>
      tpu.vector_store %arg5[%c0_12, %c0_13], %19 {strides = array<i32>} : memref<8x128xf32, #tpu.memory_space<vmem>>, vector<8x128xf32>,
    } else {
    }
    %c0 = arith.constant 0 : index
    %c0_1 = arith.constant 0 : index
    %3 = vector.load %arg2[%c0, %c0_1] : memref<16x128xf32, #tpu.memory_space<vmem>>, vector<16x128xf32>
    %c0_2 = arith.constant 0 : index
    %c0_3 = arith.constant 0 : index
    %4 = vector.load %arg3[%c0_2, %c0_3] : memref<16x128xf32, #tpu.memory_space<vmem>>, vector<16x128xf32>
    %5 = arith.subf %3, %4 : vector<16x128xf32>
    %6 = math.absf %5 : vector<16x128xf32>
    %c0_4 = arith.constant 0 : index
    %c0_5 = arith.constant 0 : index
    %7 = vector.load %arg4[%c0_4, %c0_5] : memref<16x128xf32, #tpu.memory_space<vmem>>, vector<16x128xf32>
    %8 = math.absf %7 : vector<16x128xf32>
    %cst = arith.constant 1.000000e+00 : f32
    %9 = vector.broadcast %cst : f32 to vector<16x128xf32>
    %10 = arith.subf %9, %7 : vector<16x128xf32>
    %11 = math.absf %10 : vector<16x128xf32>
    %12 = arith.addf %8, %11 : vector<16x128xf32>
    %13 = arith.mulf %12, %6 : vector<16x128xf32>
    %c0_6 = arith.constant 0 : index
    %c0_7 = arith.constant 0 : index
    %14 = vector.load %arg5[%c0_6, %c0_7] : memref<8x128xf32, #tpu.memory_space<vmem>>, vector<8x128xf32>
    %15 = vector.shape_cast %13 : vector<16x128xf32> to vector<2x8x128xf32>
    %cst_8 = arith.constant dense<0.000000e+00> : vector<8x128xf32>
    %16 = vector.multi_reduction <add>, %15, %cst_8 [0] : vector<2x8x128xf32> to vector<8x128xf32>
    %17 = arith.addf %14, %16 : vector<8x128xf32>
    %c0_9 = arith.constant 0 : index
    %c0_10 = arith.constant 0 : index
    %18 = vector.load %arg5[%c0_9, %c0_10] : memref<8x128xf32, #tpu.memory_space<vmem>>, vector<8x128xf32>
    tpu.vector_store %arg5[%c0_9, %c0_10], %17 {strides = array<i32>} : memref<8x128xf32, #tpu.memory_space<vmem>>, vector<8x128xf32>,
    return
  }
  func.func @transform_0(%arg0: i32, %arg1: i32) -> (i32, i32) {
    %c1_i32 = arith.constant 1 : i32
    %0 = arith.muli %arg0, %c1_i32 : i32
    %1 = arith.addi %0, %arg1 : i32
    %c0_i32 = arith.constant 0 : i32
    %c0_i32_0 = arith.constant 0 : i32
    return %1, %c0_i32 : i32, i32
  }
  func.func @transform_1(%arg0: i32, %arg1: i32) -> (i32, i32) {
    %c1_i32 = arith.constant 1 : i32
    %0 = arith.muli %arg0, %c1_i32 : i32
    %1 = arith.addi %0, %arg1 : i32
    %c0_i32 = arith.constant 0 : i32
    %c0_i32_0 = arith.constant 0 : i32
    return %1, %c0_i32 : i32, i32
  }
  func.func @transform_2(%arg0: i32, %arg1: i32) -> (i32, i32) {
    %c1_i32 = arith.constant 1 : i32
    %0 = arith.muli %arg0, %c1_i32 : i32
    %1 = arith.addi %0, %arg1 : i32
    %c0_i32 = arith.constant 0 : i32
    %c0_i32_0 = arith.constant 0 : i32
    return %1, %c0_i32 : i32, i32
  }
  func.func @transform_3(%arg0: i32, %arg1: i32) -> (i32, i32) {
    %c0_i32 = arith.constant 0 : i32
    %c0_i32_0 = arith.constant 0 : i32
    return %arg0, %c0_i32 : i32, i32
  }
}

</mosaic_0001>

<bundles_post_ra>
// kernel: tpu_custom_call.1
= control target key start
LH: loop header
LB: loop body
LE: loop exit
PB: predicated region body
PF: predicated region fallthrough
CT: control target
= control target key end

     0   :  { %8 = vsyncpa [#allocation3], 0  ;;  %s310_s0 = inlined_call_operand.hbm [shape: f32[16,128], index: 0, kind: input, shape index: {}]   ;;  %s311_s1 = inlined_call_operand.hbm [shape: f32[16,128], index: 1, kind: input, shape index: {}]   ;;  %s312_s2 = inlined_call_operand.hbm [shape: f32[16,128], index: 2, kind: input, shape index: {}]   ;;  %s313_s3 = inlined_call_operand.hbm [shape: f32[8,128], index: 3, kind: output, shape index: {}]  }
   0x1   :  { %9 = vsyncpa [#allocation6], 0 }
   0x2   :  { %10 = vsyncpa [#allocation4], 0  ;;  %s220_s12 = smov [#allocation5]   ;;  %s221_s14 = smov [#allocation2]  }
   0x3   :  { %s36_s13 = sshll.u32 %s220_s12, 4  ;;  %s20_s15 = sshll.u32 %s221_s14, 4  ;;  %s37_s13 = int_to_ptr.vmem [resolvable:$true] %s36_s13  ;;  %s246_s15 = int_to_ptr.vmem [resolvable:$true] %s20_s15 }
   0x4   :  { %s126_s18 = scalar_lea.hbm %s311_s1, 256 }
   0x5   :  { %p127_p0 = scmp.ne.s32.totalorder %s311_s1, %s126_s18  ;;  %p130_p1 = scmp.lt.u32.totalorder %s126_s18, %s311_s1 }
   0x7   :  { %p132_p2 = pnand %p130_p1, %p127_p0 }
   0x9   :  { %135 = shalt.err (!%p132_p2)
}
   0xa   :  { %s136_s23 = scalar_lea.vmem %s37_s13, 256  ;;  %p141_p4 = scmp.lt.s32.totalorder %s37_s13, %s37_s13 }
   0xb   :  { %p137_p3 = scmp.ne.s32.totalorder %s37_s13, %s136_s23  ;;  %p142_p5 = scmp.lt.s32.totalorder %s136_s23, %s136_s23 }
   0xd   :  { %p143_p6 = por %p142_p5, %p141_p4 }
   0xf   :  { %p144_p7 = pnand %p143_p6, %p137_p3 }
  0x11   :  { %147 = shalt.err (!%p144_p7)
}
  0x12   :  { %s222_s24 = smov 128   ;;  %s223_s25 = smov 8  }
  0x13   :  { %42 = dma.hbm_to_vmem [thread:$0]  %s311_s1, 256, %s37_s13, [#allocation6], %s222_s24, %s222_s24, %s223_s25  }
  0x14   :  { %s148_s30 = scalar_lea.hbm %s310_s0, 256 }
  0x15   :  { %p149_p8 = scmp.ne.s32.totalorder %s310_s0, %s148_s30  ;;  %p152_p9 = scmp.lt.u32.totalorder %s148_s30, %s310_s0 }
  0x17   :  { %p154_p10 = pnand %p152_p9, %p149_p8 }
  0x19   :  { %157 = shalt.err (!%p154_p10)
}
  0x1a   :  { %s158_s8 = scalar_lea.vmem %s246_s15, 256  ;;  %p163_p12 = scmp.lt.s32.totalorder %s246_s15, %s246_s15 }
  0x1b   :  { %p159_p11 = scmp.ne.s32.totalorder %s246_s15, %s158_s8  ;;  %p164_p13 = scmp.lt.s32.totalorder %s158_s8, %s158_s8 }
  0x1d   :  { %p165_p0 = por %p164_p13, %p163_p12 }
  0x1f   :  { %p166_p1 = pnand %p165_p0, %p159_p11 }
  0x21   :  { %169 = shalt.err (!%p166_p1)
}
  0x22   :  { %26 = dma.hbm_to_vmem [thread:$0]  %s310_s0, 256, %s246_s15, [#allocation3], %s222_s24, %s222_s24, %s223_s25  }
  0x23   :  { %s224_s10 = smov [#allocation7]   ;;  %s170_s14 = scalar_lea.hbm %s312_s2, 256 }
  0x24   :  { %s52_s11 = sshll.u32 %s224_s10, 4  ;;  %p171_p2 = scmp.ne.s32.totalorder %s312_s2, %s170_s14  ;;  %s53_s11 = int_to_ptr.vmem [resolvable:$true] %s52_s11 }
  0x25   :  { %p174_p3 = scmp.lt.u32.totalorder %s170_s14, %s312_s2 }
  0x27   :  { %p176_p4 = pnand %p174_p3, %p171_p2 }
  0x29   :  { %179 = shalt.err (!%p176_p4)
}
  0x2a   :  { %s180_s20 = scalar_lea.vmem %s53_s11, 256  ;;  %p185_p6 = scmp.lt.s32.totalorder %s53_s11, %s53_s11 }
  0x2b   :  { %p181_p5 = scmp.ne.s32.totalorder %s53_s11, %s180_s20  ;;  %p186_p7 = scmp.lt.s32.totalorder %s180_s20, %s180_s20 }
  0x2d   :  { %p187_p8 = por %p186_p7, %p185_p6 }
  0x2f   :  { %p188_p9 = pnand %p187_p8, %p181_p5 }
  0x31   :  { %191 = shalt.err (!%p188_p9)
}
  0x32   :  { %58 = dma.hbm_to_vmem [thread:$0]  %s312_s2, 256, %s53_s11, [#allocation6], %s222_s24, %s222_s24, %s223_s25  }
  0x33   :  { %214 = dma.done.wait [#allocation3], 256  }
  0x34   :  { %215 = vsyncadd [#allocation3], 4294967040 }
  0x35   :  { %216 = dma.done.wait [#allocation6], 512  }
  0x36   :  { %217 = vsyncadd [#allocation6], 4294966784  ;;  %v79_v0 = vld [vmem:[#allocation2] sm:$0xff]  ;;  %v80_v1 = vld [vmem:[#allocation2 + $0x8] sm:$0xff]  ;;  %s225_s2 = smov [#allocation8]  }
  0x37   :  { %v81_v2 = vld [vmem:[#allocation5] sm:$0xff]  ;;  %v82_v3 = vld [vmem:[#allocation5 + $0x8] sm:$0xff]  ;;  %v87_v5 = vld [vmem:[#allocation7] sm:$0xff]  ;;  %s109_s21 = sshll.u32 %s225_s2, 4  ;;  %s110_s21 = int_to_ptr.vmem [resolvable:$true] %s109_s21 }
  0x38   :  { %v83_v4 = vsub.f32 %v79_v0, %v81_v2  ;;  %v88_v6 = vld [vmem:[#allocation7 + $0x8] sm:$0xff]  ;;  %v84_v7 = vsub.f32 %v80_v1, %v82_v3  ;;  %v89_v8 = vand.u32 2147483647, %v87_v5  ;;  %v91_v9 = vsub.f32 1.0, %v87_v5  ;;  %s192_s22 = scalar_lea.vmem %s110_s21, 128  ;;  %p197_p11 = scmp.lt.s32.totalorder %s110_s21, %s110_s21 }
  0x39   :  { %v90_v10 = vand.u32 2147483647, %v88_v6  ;;  %v92_v11 = vsub.f32 1.0, %v88_v6  ;;  %p193_p10 = scmp.ne.s32.totalorder %s110_s21, %s192_s22  ;;  %p198_p12 = scmp.lt.s32.totalorder %s192_s22, %s192_s22 }
  0x3a   :  { %v85_v12 = vand.u32 2147483647, %v83_v4  ;;  %v93_v13 = vand.u32 2147483647, %v91_v9  ;;  %v86_v14 = vand.u32 2147483647, %v84_v7 }
  0x3b   :  { %v94_v15 = vand.u32 2147483647, %v92_v11  ;;  %p199_p13 = por %p198_p12, %p197_p11 }
  0x3c   :  { %v95_v16 = vadd.f32 %v93_v13, %v89_v8 }
  0x3d   :  { %v96_v17 = vadd.f32 %v94_v15, %v90_v10  ;;  %p200_p0 = pnand %p199_p13, %p193_p10 }
  0x3e   :  { %v97_v18 = vmul.f32 %v95_v16, %v85_v12 }
  0x3f   :  { %v98_v19 = vmul.f32 %v96_v17, %v86_v14 }
  0x41   :  { %v100_v20 = vadd.f32 %v98_v19, %v97_v18 }
  0x43   :  { %102 = vst [vmem:[#allocation8] sm:$0xff] %v100_v20 }
  0x44   :  { %203 = shalt.err (!%p200_p0)
}
  0x45   :  { %s204_s25 = scalar_lea.hbm %s313_s3, 128 }
  0x46   :  { %p205_p1 = scmp.ne.s32.totalorder %s313_s3, %s204_s25  ;;  %p208_p2 = scmp.lt.u32.totalorder %s204_s25, %s313_s3 }
  0x48   :  { %p210_p3 = pnand %p208_p2, %p205_p1 }
  0x4a   :  { %213 = shalt.err (!%p210_p3)
}
  0x4b   :  { %112 = dma.vmem_to_hbm [thread:$0]  %s110_s21, 128, %s313_s3, [#allocation4]  }
  0x4c   :  { %218 = dma.done.wait [#allocation4], 128  }
  0x4d   :  { %219 = vsyncadd [#allocation4], 4294967168 }
  0x4e   :  { %116 = vsyncpa [#allocation3], 1 }
  0x4f   :  { %117 = vsyncpa [#allocation6], 1 }
  0x50   :  { %118 = vsyncpa [#allocation4], 1 }

</bundles_post_ra>
